<compile_context>
chip_gen: v6e
topology: v6e:2x2x1
jax: 0.10.0
libtpu: 0.0.40
codegen_flags: <defaults>
</compile_context>

<pallas_src>
import functools

import jax
import jax.numpy as jnp
from jax.experimental import pallas as pl
from jax.experimental.pallas import tpu as pltpu


def bilstm_kernel(x_ref, w_all_ref, b_all_ref, whh_f_ref,
                  fcw_f_ref, fcw_b_ref, fcb_ref, out_ref,
                  *, hidden_size, seq_len, batch):
    """Whole BiLSTM forward (last-timestep head) in one kernel invocation.

    x_ref is time-major flattened bf16: [T*B, D]; row t*B + b is timestep t of seq b.
    w_all_ref is [D, 8H] bf16 = [W_ih_fwd^T | W_ih_bwd^T], gate order (i, f, o, g).
    whh_f_ref is [H, 4H] bf16, same gate order. Biases / fc weights stay f32.
    """
    H = hidden_size
    T = seq_len
    B = batch
    H4 = 4 * H

    # ---- Hoisted input projection for BOTH directions (single bf16 MXU pass). ----
    xproj = (jnp.dot(x_ref[...], w_all_ref[...],
                     preferred_element_type=jnp.float32)
             + b_all_ref[...])                                  # [T*B, 8H] f32

    # ---- Backward direction (issued before the serial forward chain). ----
    # NOTE(correctness): PyTorch's lstm_out[:, -1, H:] is the reverse-direction
    # hidden state at the ORIGINAL last timestep, i.e. exactly one step of the
    # reversed scan (seeing only x[:, T-1]) from zero (h, c). With h0 = c0 = 0 the
    # h @ W_hh_reverse term and the forget-gate contribution vanish, so neither is
    # computed here. Valid ONLY for the last-timestep read-out.
    gates_b = xproj[(T - 1) * B:T * B, H4:]                     # [B, 4H]
    sig_b = jax.nn.sigmoid(gates_b[:, :3 * H])                  # i, f, o in one EUP call
    i_b = sig_b[:, :H]
    o_b = sig_b[:, 2 * H:3 * H]
    g_b = jnp.tanh(gates_b[:, 3 * H:])
    h_bwd = o_b * jnp.tanh(i_b * g_b)                           # [B, H]

    # ---- Forward direction: fully unrolled T-step recurrence (latency-critical). ----
    whh = whh_f_ref[...]                                        # bf16 [H, 4H]
    h = None
    c = None
    for t in range(T):                                          # T is static -> unrolled
        g_t = xproj[t * B:(t + 1) * B, :H4]                     # [B, 4H], static slice
        if t == 0:
            gates = g_t                                         # h0 = 0 -> no hh matmul
        else:
            # bf16 operands + f32 accumulation -> one MXU pass per step.
            gates = g_t + jnp.dot(h.astype(jnp.bfloat16), whh,
                                  preferred_element_type=jnp.float32)
        # Gate order (i, f, o, g): one sigmoid over 3H lanes + two tanh per step.
        # (Sub-vreg lane slices below may add implicit relayouts; accepted knowingly
        # — they dual-issue against the MXU/EUP work at these widths.)
        sig = jax.nn.sigmoid(gates[:, :3 * H])
        i = sig[:, :H]
        f = sig[:, H:2 * H]
        o = sig[:, 2 * H:3 * H]
        g = jnp.tanh(gates[:, 3 * H:])
        c = i * g if t == 0 else f * c + i * g                  # c0 = 0
        h = o * jnp.tanh(c)

    # ---- fc head without a cross-lane concat: sum of two small dots (f32). ----
    out_ref[...] = (jnp.dot(h, fcw_f_ref[...], preferred_element_type=jnp.float32)
                    + jnp.dot(h_bwd, fcw_b_ref[...], preferred_element_type=jnp.float32)
                    + fcb_ref[...])


def prepare_params(params, hidden_size):
    """One-time weight prep: permute gate columns (i,f,g,o)->(i,f,o,g), fuse the two
    input-projection weights lane-wise, pre-cast matmul operands to bf16, pre-split
    the fc weight. Called once outside the jitted forward."""
    H = hidden_size

    def reorder(w):  # (i, f, g, o) -> (i, f, o, g) along the 4H column axis
        return jnp.concatenate([w[:, :2 * H], w[:, 3 * H:], w[:, 2 * H:3 * H]], axis=1)

    w_all = jnp.concatenate([reorder(params["wih_f"]),
                             reorder(params["wih_b"])], axis=1).astype(jnp.bfloat16)
    b_all = jnp.concatenate([reorder(params["b_f"]),
                             reorder(params["b_b"])], axis=1)            # f32 [1, 8H]
    return {
        "w_all": w_all,                                                  # bf16 [D, 8H]
        "b_all": b_all,
        "whh_f": reorder(params["whh_f"]).astype(jnp.bfloat16),         # bf16 [H, 4H]
        "fcw_f": params["fcw"][:H],                                      # f32 [H, L]
        "fcw_b": params["fcw"][H:],                                      # f32 [H, L]
        "fcb":   params["fcb"],                                          # f32 [1, L]
    }


def _bilstm_forward(x, prep, hidden_size):
    """x: [B, T, D] float32 (batch_first, like PyTorch). Returns [B, latent_dim]."""
    B, T, D = x.shape
    H = hidden_size
    L = prep["fcb"].shape[1]

    # Time-major, flattened over (T, B) so per-step kernel slices are contiguous
    # sublane rows; under jit this transpose+cast is a single tiny fused op.
    # TODO(synk): pltpu.CompilerParams(allow_input_fusion=[0]) could fold this into
    # the pallas_call entirely; left off to keep compilation maximally robust.
    x_tm = jnp.transpose(x, (1, 0, 2)).reshape(T * B, D).astype(jnp.bfloat16)

    vmem = pl.BlockSpec(memory_space=pltpu.MemorySpace.VMEM)
    return pl.pallas_call(
        functools.partial(bilstm_kernel, hidden_size=H, seq_len=T, batch=B),
        out_shape=jax.ShapeDtypeStruct((B, L), jnp.float32),
        in_specs=[vmem] * 7,
        out_specs=vmem,
    )(x_tm, prep["w_all"], prep["b_all"], prep["whh_f"],
      prep["fcw_f"], prep["fcw_b"], prep["fcb"])


bilstm_forward = jax.jit(_bilstm_forward, static_argnums=(2,))


def init_params(key, input_dim, hidden_size, latent_dim):
    """Deterministic init mimicking PyTorch's U(-1/sqrt(H), 1/sqrt(H)). Weights are
    stored transposed for right-multiplication in PyTorch gate order (i, f, g, o);
    the two LSTM biases (b_ih + b_hh) are pre-summed. whh_b is kept only for the
    pure-JAX reference."""
    H, D, L = hidden_size, input_dim, latent_dim
    k = 1.0 / jnp.sqrt(jnp.float32(H))
    kl = 1.0 / jnp.sqrt(jnp.float32(2 * H))
    keys = jax.random.split(key, 10)
    u = lambda kk, shape, bound: jax.random.uniform(
        kk, shape, jnp.float32, minval=-bound, maxval=bound)
    return {
        # forward direction
        "wih_f": u(keys[0], (D, 4 * H), k),
        "whh_f": u(keys[1], (H, 4 * H), k),
        "b_f":   u(keys[2], (1, 4 * H), k) + u(keys[3], (1, 4 * H), k),
        # backward direction
        "wih_b": u(keys[4], (D, 4 * H), k),
        "whh_b": u(keys[5], (H, 4 * H), k),
        "b_b":   u(keys[6], (1, 4 * H), k) + u(keys[7], (1, 4 * H), k),
        # fc head
        "fcw":   u(keys[8], (2 * H, L), kl),
        "fcb":   u(keys[9], (1, L), kl),
    }


def reference_bilstm(x, params, hidden_size):
    """Pure-JAX f32 reference reproducing the full PyTorch bidirectional LSTM + fc."""
    B, T, D = x.shape
    H = hidden_size

    def cell(x_t, h, c, wih_t, whh_t, b):
        gates = x_t @ wih_t + h @ whh_t + b
        i = jax.nn.sigmoid(gates[:, :H])
        f = jax.nn.sigmoid(gates[:, H:2 * H])
        g = jnp.tanh(gates[:, 2 * H:3 * H])
        o = jax.nn.sigmoid(gates[:, 3 * H:])
        c = f * c + i * g
        return o * jnp.tanh(c), c

    def run(xs, wih_t, whh_t, b):
        h = jnp.zeros((B, H), jnp.float32)
        c = jnp.zeros((B, H), jnp.float32)
        outs = []
        for t in range(xs.shape[1]):
            h, c = cell(xs[:, t], h, c, wih_t, whh_t, b)
            outs.append(h)
        return jnp.stack(outs, axis=1)

    out_f = run(x, params["wih_f"], params["whh_f"], params["b_f"])
    out_b = run(x[:, ::-1], params["wih_b"], params["whh_b"], params["b_b"])[:, ::-1]
    lstm_out = jnp.concatenate([out_f, out_b], axis=-1)        # [B, T, 2H]
    last = lstm_out[:, -1, :]                                  # [B, 2H]
    return last @ params["fcw"] + params["fcb"]


if __name__ == "__main__":
    # Small shapes implied by the module: batch=2, seq=8, input_dim=16,
    # hidden_size=32, latent_dim=8, num_layers=1, bidirectional=True.
    # (dropout is inactive in the spec since num_layers == 1.)
    B, T, D, H, L = 2, 8, 16, 32, 8

    key = jax.random.PRNGKey(0)
    kx, kp = jax.random.split(key)
    x = jax.random.normal(kx, (B, T, D), jnp.float32)
    params = init_params(kp, D, H, L)
    prep = prepare_params(params, H)

    out = bilstm_forward(x, prep, H)
    out = jax.block_until_ready(out)

    ref = reference_bilstm(x, params, H)
    assert out.shape == (B, L), out.shape
    # Tolerance accounts for bf16 matmul operands (f32 accumulation) in the kernel
    # vs the all-f32 reference.
    assert jnp.allclose(out, ref, atol=2e-2, rtol=2e-2), (out, ref)

    print("KERNEL_OK")
</pallas_src>

<mosaic_0001>
module attributes {stable_mosaic.version = 11 : i64} {
  func.func @bilstm_kernel(%arg0: memref<16x16xbf16, #tpu.memory_space<vmem>>, %arg1: memref<16x256xbf16, #tpu.memory_space<vmem>>, %arg2: memref<1x256xf32, #tpu.memory_space<vmem>>, %arg3: memref<32x128xbf16, #tpu.memory_space<vmem>>, %arg4: memref<32x8xf32, #tpu.memory_space<vmem>>, %arg5: memref<32x8xf32, #tpu.memory_space<vmem>>, %arg6: memref<1x8xf32, #tpu.memory_space<vmem>>, %arg7: memref<2x8xf32, #tpu.memory_space<vmem>>) attributes {dimension_semantics = [], scalar_prefetch = 0 : i64, scratch_operands = 0 : i64, tpu.core_type = #tpu.core_type<tc>} {
    %c0 = arith.constant 0 : index
    %c0_0 = arith.constant 0 : index
    %0 = vector.load %arg0[%c0, %c0_0] : memref<16x16xbf16, #tpu.memory_space<vmem>>, vector<16x16xbf16>
    %c0_1 = arith.constant 0 : index
    %c0_2 = arith.constant 0 : index
    %1 = vector.load %arg1[%c0_1, %c0_2] : memref<16x256xbf16, #tpu.memory_space<vmem>>, vector<16x256xbf16>
    %cst = arith.constant dense<0.000000e+00> : vector<16x256xf32>
    %2 = tpu.matmul %0, %1, %cst {dimension_numbers = #tpu.dot_dimension_numbers<[1], [0], [0], [1], [0, 0, 1, 1], [], []>} : vector<16x16xbf16>, vector<16x256xbf16>, vector<16x256xf32> -> vector<16x256xf32>
    %c0_3 = arith.constant 0 : index
    %c0_4 = arith.constant 0 : index
    %3 = vector.load %arg2[%c0_3, %c0_4] : memref<1x256xf32, #tpu.memory_space<vmem>>, vector<1x256xf32>
    %4 = vector.broadcast %3 : vector<1x256xf32> to vector<16x256xf32>
    %5 = arith.addf %2, %4 : vector<16x256xf32>
    %6 = vector.extract_strided_slice %5 {offsets = [14, 128], sizes = [2, 128], strides = [1, 1]} : vector<16x256xf32> to vector<2x128xf32>
    %7 = vector.extract_strided_slice %6 {offsets = [0, 0], sizes = [2, 96], strides = [1, 1]} : vector<2x128xf32> to vector<2x96xf32>
    %8 = arith.negf %7 : vector<2x96xf32>
    %9 = math.exp %8 : vector<2x96xf32>
    %cst_5 = arith.constant 1.000000e+00 : f32
    %10 = vector.broadcast %cst_5 : f32 to vector<2x96xf32>
    %11 = arith.addf %10, %9 : vector<2x96xf32>
    %12 = arith.divf %10, %11 : vector<2x96xf32>
    %13 = vector.extract_strided_slice %12 {offsets = [0, 0], sizes = [2, 32], strides = [1, 1]} : vector<2x96xf32> to vector<2x32xf32>
    %14 = vector.extract_strided_slice %12 {offsets = [0, 64], sizes = [2, 32], strides = [1, 1]} : vector<2x96xf32> to vector<2x32xf32>
    %15 = vector.extract_strided_slice %6 {offsets = [0, 96], sizes = [2, 32], strides = [1, 1]} : vector<2x128xf32> to vector<2x32xf32>
    %16 = math.tanh %15 : vector<2x32xf32>
    %17 = arith.mulf %13, %16 : vector<2x32xf32>
    %18 = math.tanh %17 : vector<2x32xf32>
    %19 = arith.mulf %14, %18 : vector<2x32xf32>
    %c0_6 = arith.constant 0 : index
    %c0_7 = arith.constant 0 : index
    %20 = vector.load %arg3[%c0_6, %c0_7] : memref<32x128xbf16, #tpu.memory_space<vmem>>, vector<32x128xbf16>
    %21 = vector.extract_strided_slice %5 {offsets = [0, 0], sizes = [2, 128], strides = [1, 1]} : vector<16x256xf32> to vector<2x128xf32>
    %22 = vector.extract_strided_slice %21 {offsets = [0, 0], sizes = [2, 96], strides = [1, 1]} : vector<2x128xf32> to vector<2x96xf32>
    %23 = arith.negf %22 : vector<2x96xf32>
    %24 = math.exp %23 : vector<2x96xf32>
    %cst_8 = arith.constant 1.000000e+00 : f32
    %25 = vector.broadcast %cst_8 : f32 to vector<2x96xf32>
    %26 = arith.addf %25, %24 : vector<2x96xf32>
    %27 = arith.divf %25, %26 : vector<2x96xf32>
    %28 = vector.extract_strided_slice %27 {offsets = [0, 0], sizes = [2, 32], strides = [1, 1]} : vector<2x96xf32> to vector<2x32xf32>
    %29 = vector.extract_strided_slice %27 {offsets = [0, 64], sizes = [2, 32], strides = [1, 1]} : vector<2x96xf32> to vector<2x32xf32>
    %30 = vector.extract_strided_slice %21 {offsets = [0, 96], sizes = [2, 32], strides = [1, 1]} : vector<2x128xf32> to vector<2x32xf32>
    %31 = math.tanh %30 : vector<2x32xf32>
    %32 = arith.mulf %28, %31 : vector<2x32xf32>
    %33 = math.tanh %32 : vector<2x32xf32>
    %34 = arith.mulf %29, %33 : vector<2x32xf32>
    %35 = vector.extract_strided_slice %5 {offsets = [2, 0], sizes = [2, 128], strides = [1, 1]} : vector<16x256xf32> to vector<2x128xf32>
    %36 = arith.truncf %34 : vector<2x32xf32> to vector<2x32xbf16>
    %cst_9 = arith.constant dense<0.000000e+00> : vector<2x128xf32>
    %37 = tpu.matmul %36, %20, %cst_9 {dimension_numbers = #tpu.dot_dimension_numbers<[1], [0], [0], [1], [0, 0, 1, 1], [], []>} : vector<2x32xbf16>, vector<32x128xbf16>, vector<2x128xf32> -> vector<2x128xf32>
    %38 = arith.addf %35, %37 : vector<2x128xf32>
    %39 = vector.extract_strided_slice %38 {offsets = [0, 0], sizes = [2, 96], strides = [1, 1]} : vector<2x128xf32> to vector<2x96xf32>
    %40 = arith.negf %39 : vector<2x96xf32>
    %41 = math.exp %40 : vector<2x96xf32>
    %cst_10 = arith.constant 1.000000e+00 : f32
    %42 = vector.broadcast %cst_10 : f32 to vector<2x96xf32>
    %43 = arith.addf %42, %41 : vector<2x96xf32>
    %44 = arith.divf %42, %43 : vector<2x96xf32>
    %45 = vector.extract_strided_slice %44 {offsets = [0, 0], sizes = [2, 32], strides = [1, 1]} : vector<2x96xf32> to vector<2x32xf32>
    %46 = vector.extract_strided_slice %44 {offsets = [0, 32], sizes = [2, 32], strides = [1, 1]} : vector<2x96xf32> to vector<2x32xf32>
    %47 = vector.extract_strided_slice %44 {offsets = [0, 64], sizes = [2, 32], strides = [1, 1]} : vector<2x96xf32> to vector<2x32xf32>
    %48 = vector.extract_strided_slice %38 {offsets = [0, 96], sizes = [2, 32], strides = [1, 1]} : vector<2x128xf32> to vector<2x32xf32>
    %49 = math.tanh %48 : vector<2x32xf32>
    %50 = arith.mulf %46, %32 : vector<2x32xf32>
    %51 = arith.mulf %45, %49 : vector<2x32xf32>
    %52 = arith.addf %50, %51 : vector<2x32xf32>
    %53 = math.tanh %52 : vector<2x32xf32>
    %54 = arith.mulf %47, %53 : vector<2x32xf32>
    %55 = vector.extract_strided_slice %5 {offsets = [4, 0], sizes = [2, 128], strides = [1, 1]} : vector<16x256xf32> to vector<2x128xf32>
    %56 = arith.truncf %54 : vector<2x32xf32> to vector<2x32xbf16>
    %cst_11 = arith.constant dense<0.000000e+00> : vector<2x128xf32>
    %57 = tpu.matmul %56, %20, %cst_11 {dimension_numbers = #tpu.dot_dimension_numbers<[1], [0], [0], [1], [0, 0, 1, 1], [], []>} : vector<2x32xbf16>, vector<32x128xbf16>, vector<2x128xf32> -> vector<2x128xf32>
    %58 = arith.addf %55, %57 : vector<2x128xf32>
    %59 = vector.extract_strided_slice %58 {offsets = [0, 0], sizes = [2, 96], strides = [1, 1]} : vector<2x128xf32> to vector<2x96xf32>
    %60 = arith.negf %59 : vector<2x96xf32>
    %61 = math.exp %60 : vector<2x96xf32>
    %cst_12 = arith.constant 1.000000e+00 : f32
    %62 = vector.broadcast %cst_12 : f32 to vector<2x96xf32>
    %63 = arith.addf %62, %61 : vector<2x96xf32>
    %64 = arith.divf %62, %63 : vector<2x96xf32>
    %65 = vector.extract_strided_slice %64 {offsets = [0, 0], sizes = [2, 32], strides = [1, 1]} : vector<2x96xf32> to vector<2x32xf32>
    %66 = vector.extract_strided_slice %64 {offsets = [0, 32], sizes = [2, 32], strides = [1, 1]} : vector<2x96xf32> to vector<2x32xf32>
    %67 = vector.extract_strided_slice %64 {offsets = [0, 64], sizes = [2, 32], strides = [1, 1]} : vector<2x96xf32> to vector<2x32xf32>
    %68 = vector.extract_strided_slice %58 {offsets = [0, 96], sizes = [2, 32], strides = [1, 1]} : vector<2x128xf32> to vector<2x32xf32>
    %69 = math.tanh %68 : vector<2x32xf32>
    %70 = arith.mulf %66, %52 : vector<2x32xf32>
    %71 = arith.mulf %65, %69 : vector<2x32xf32>
    %72 = arith.addf %70, %71 : vector<2x32xf32>
    %73 = math.tanh %72 : vector<2x32xf32>
    %74 = arith.mulf %67, %73 : vector<2x32xf32>
    %75 = vector.extract_strided_slice %5 {offsets = [6, 0], sizes = [2, 128], strides = [1, 1]} : vector<16x256xf32> to vector<2x128xf32>
    %76 = arith.truncf %74 : vector<2x32xf32> to vector<2x32xbf16>
    %cst_13 = arith.constant dense<0.000000e+00> : vector<2x128xf32>
    %77 = tpu.matmul %76, %20, %cst_13 {dimension_numbers = #tpu.dot_dimension_numbers<[1], [0], [0], [1], [0, 0, 1, 1], [], []>} : vector<2x32xbf16>, vector<32x128xbf16>, vector<2x128xf32> -> vector<2x128xf32>
    %78 = arith.addf %75, %77 : vector<2x128xf32>
    %79 = vector.extract_strided_slice %78 {offsets = [0, 0], sizes = [2, 96], strides = [1, 1]} : vector<2x128xf32> to vector<2x96xf32>
    %80 = arith.negf %79 : vector<2x96xf32>
    %81 = math.exp %80 : vector<2x96xf32>
    %cst_14 = arith.constant 1.000000e+00 : f32
    %82 = vector.broadcast %cst_14 : f32 to vector<2x96xf32>
    %83 = arith.addf %82, %81 : vector<2x96xf32>
    %84 = arith.divf %82, %83 : vector<2x96xf32>
    %85 = vector.extract_strided_slice %84 {offsets = [0, 0], sizes = [2, 32], strides = [1, 1]} : vector<2x96xf32> to vector<2x32xf32>
    %86 = vector.extract_strided_slice %84 {offsets = [0, 32], sizes = [2, 32], strides = [1, 1]} : vector<2x96xf32> to vector<2x32xf32>
    %87 = vector.extract_strided_slice %84 {offsets = [0, 64], sizes = [2, 32], strides = [1, 1]} : vector<2x96xf32> to vector<2x32xf32>
    %88 = vector.extract_strided_slice %78 {offsets = [0, 96], sizes = [2, 32], strides = [1, 1]} : vector<2x128xf32> to vector<2x32xf32>
    %89 = math.tanh %88 : vector<2x32xf32>
    %90 = arith.mulf %86, %72 : vector<2x32xf32>
    %91 = arith.mulf %85, %89 : vector<2x32xf32>
    %92 = arith.addf %90, %91 : vector<2x32xf32>
    %93 = math.tanh %92 : vector<2x32xf32>
    %94 = arith.mulf %87, %93 : vector<2x32xf32>
    %95 = vector.extract_strided_slice %5 {offsets = [8, 0], sizes = [2, 128], strides = [1, 1]} : vector<16x256xf32> to vector<2x128xf32>
    %96 = arith.truncf %94 : vector<2x32xf32> to vector<2x32xbf16>
    %cst_15 = arith.constant dense<0.000000e+00> : vector<2x128xf32>
    %97 = tpu.matmul %96, %20, %cst_15 {dimension_numbers = #tpu.dot_dimension_numbers<[1], [0], [0], [1], [0, 0, 1, 1], [], []>} : vector<2x32xbf16>, vector<32x128xbf16>, vector<2x128xf32> -> vector<2x128xf32>
    %98 = arith.addf %95, %97 : vector<2x128xf32>
    %99 = vector.extract_strided_slice %98 {offsets = [0, 0], sizes = [2, 96], strides = [1, 1]} : vector<2x128xf32> to vector<2x96xf32>
    %100 = arith.negf %99 : vector<2x96xf32>
    %101 = math.exp %100 : vector<2x96xf32>
    %cst_16 = arith.constant 1.000000e+00 : f32
    %102 = vector.broadcast %cst_16 : f32 to vector<2x96xf32>
    %103 = arith.addf %102, %101 : vector<2x96xf32>
    %104 = arith.divf %102, %103 : vector<2x96xf32>
    %105 = vector.extract_strided_slice %104 {offsets = [0, 0], sizes = [2, 32], strides = [1, 1]} : vector<2x96xf32> to vector<2x32xf32>
    %106 = vector.extract_strided_slice %104 {offsets = [0, 32], sizes = [2, 32], strides = [1, 1]} : vector<2x96xf32> to vector<2x32xf32>
    %107 = vector.extract_strided_slice %104 {offsets = [0, 64], sizes = [2, 32], strides = [1, 1]} : vector<2x96xf32> to vector<2x32xf32>
    %108 = vector.extract_strided_slice %98 {offsets = [0, 96], sizes = [2, 32], strides = [1, 1]} : vector<2x128xf32> to vector<2x32xf32>
    %109 = math.tanh %108 : vector<2x32xf32>
    %110 = arith.mulf %106, %92 : vector<2x32xf32>
    %111 = arith.mulf %105, %109 : vector<2x32xf32>
    %112 = arith.addf %110, %111 : vector<2x32xf32>
    %113 = math.tanh %112 : vector<2x32xf32>
    %114 = arith.mulf %107, %113 : vector<2x32xf32>
    %115 = vector.extract_strided_slice %5 {offsets = [10, 0], sizes = [2, 128], strides = [1, 1]} : vector<16x256xf32> to vector<2x128xf32>
    %116 = arith.truncf %114 : vector<2x32xf32> to vector<2x32xbf16>
    %cst_17 = arith.constant dense<0.000000e+00> : vector<2x128xf32>
    %117 = tpu.matmul %116, %20, %cst_17 {dimension_numbers = #tpu.dot_dimension_numbers<[1], [0], [0], [1], [0, 0, 1, 1], [], []>} : vector<2x32xbf16>, vector<32x128xbf16>, vector<2x128xf32> -> vector<2x128xf32>
    %118 = arith.addf %115, %117 : vector<2x128xf32>
    %119 = vector.extract_strided_slice %118 {offsets = [0, 0], sizes = [2, 96], strides = [1, 1]} : vector<2x128xf32> to vector<2x96xf32>
    %120 = arith.negf %119 : vector<2x96xf32>
    %121 = math.exp %120 : vector<2x96xf32>
    %cst_18 = arith.constant 1.000000e+00 : f32
    %122 = vector.broadcast %cst_18 : f32 to vector<2x96xf32>
    %123 = arith.addf %122, %121 : vector<2x96xf32>
    %124 = arith.divf %122, %123 : vector<2x96xf32>
    %125 = vector.extract_strided_slice %124 {offsets = [0, 0], sizes = [2, 32], strides = [1, 1]} : vector<2x96xf32> to vector<2x32xf32>
    %126 = vector.extract_strided_slice %124 {offsets = [0, 32], sizes = [2, 32], strides = [1, 1]} : vector<2x96xf32> to vector<2x32xf32>
    %127 = vector.extract_strided_slice %124 {offsets = [0, 64], sizes = [2, 32], strides = [1, 1]} : vector<2x96xf32> to vector<2x32xf32>
    %128 = vector.extract_strided_slice %118 {offsets = [0, 96], sizes = [2, 32], strides = [1, 1]} : vector<2x128xf32> to vector<2x32xf32>
    %129 = math.tanh %128 : vector<2x32xf32>
    %130 = arith.mulf %126, %112 : vector<2x32xf32>
    %131 = arith.mulf %125, %129 : vector<2x32xf32>
    %132 = arith.addf %130, %131 : vector<2x32xf32>
    %133 = math.tanh %132 : vector<2x32xf32>
    %134 = arith.mulf %127, %133 : vector<2x32xf32>
    %135 = vector.extract_strided_slice %5 {offsets = [12, 0], sizes = [2, 128], strides = [1, 1]} : vector<16x256xf32> to vector<2x128xf32>
    %136 = arith.truncf %134 : vector<2x32xf32> to vector<2x32xbf16>
    %cst_19 = arith.constant dense<0.000000e+00> : vector<2x128xf32>
    %137 = tpu.matmul %136, %20, %cst_19 {dimension_numbers = #tpu.dot_dimension_numbers<[1], [0], [0], [1], [0, 0, 1, 1], [], []>} : vector<2x32xbf16>, vector<32x128xbf16>, vector<2x128xf32> -> vector<2x128xf32>
    %138 = arith.addf %135, %137 : vector<2x128xf32>
    %139 = vector.extract_strided_slice %138 {offsets = [0, 0], sizes = [2, 96], strides = [1, 1]} : vector<2x128xf32> to vector<2x96xf32>
    %140 = arith.negf %139 : vector<2x96xf32>
    %141 = math.exp %140 : vector<2x96xf32>
    %cst_20 = arith.constant 1.000000e+00 : f32
    %142 = vector.broadcast %cst_20 : f32 to vector<2x96xf32>
    %143 = arith.addf %142, %141 : vector<2x96xf32>
    %144 = arith.divf %142, %143 : vector<2x96xf32>
    %145 = vector.extract_strided_slice %144 {offsets = [0, 0], sizes = [2, 32], strides = [1, 1]} : vector<2x96xf32> to vector<2x32xf32>
    %146 = vector.extract_strided_slice %144 {offsets = [0, 32], sizes = [2, 32], strides = [1, 1]} : vector<2x96xf32> to vector<2x32xf32>
    %147 = vector.extract_strided_slice %144 {offsets = [0, 64], sizes = [2, 32], strides = [1, 1]} : vector<2x96xf32> to vector<2x32xf32>
    %148 = vector.extract_strided_slice %138 {offsets = [0, 96], sizes = [2, 32], strides = [1, 1]} : vector<2x128xf32> to vector<2x32xf32>
    %149 = math.tanh %148 : vector<2x32xf32>
    %150 = arith.mulf %146, %132 : vector<2x32xf32>
    %151 = arith.mulf %145, %149 : vector<2x32xf32>
    %152 = arith.addf %150, %151 : vector<2x32xf32>
    %153 = math.tanh %152 : vector<2x32xf32>
    %154 = arith.mulf %147, %153 : vector<2x32xf32>
    %155 = vector.extract_strided_slice %5 {offsets = [14, 0], sizes = [2, 128], strides = [1, 1]} : vector<16x256xf32> to vector<2x128xf32>
    %156 = arith.truncf %154 : vector<2x32xf32> to vector<2x32xbf16>
    %cst_21 = arith.constant dense<0.000000e+00> : vector<2x128xf32>
    %157 = tpu.matmul %156, %20, %cst_21 {dimension_numbers = #tpu.dot_dimension_numbers<[1], [0], [0], [1], [0, 0, 1, 1], [], []>} : vector<2x32xbf16>, vector<32x128xbf16>, vector<2x128xf32> -> vector<2x128xf32>
    %158 = arith.addf %155, %157 : vector<2x128xf32>
    %159 = vector.extract_strided_slice %158 {offsets = [0, 0], sizes = [2, 96], strides = [1, 1]} : vector<2x128xf32> to vector<2x96xf32>
    %160 = arith.negf %159 : vector<2x96xf32>
    %161 = math.exp %160 : vector<2x96xf32>
    %cst_22 = arith.constant 1.000000e+00 : f32
    %162 = vector.broadcast %cst_22 : f32 to vector<2x96xf32>
    %163 = arith.addf %162, %161 : vector<2x96xf32>
    %164 = arith.divf %162, %163 : vector<2x96xf32>
    %165 = vector.extract_strided_slice %164 {offsets = [0, 0], sizes = [2, 32], strides = [1, 1]} : vector<2x96xf32> to vector<2x32xf32>
    %166 = vector.extract_strided_slice %164 {offsets = [0, 32], sizes = [2, 32], strides = [1, 1]} : vector<2x96xf32> to vector<2x32xf32>
    %167 = vector.extract_strided_slice %164 {offsets = [0, 64], sizes = [2, 32], strides = [1, 1]} : vector<2x96xf32> to vector<2x32xf32>
    %168 = vector.extract_strided_slice %158 {offsets = [0, 96], sizes = [2, 32], strides = [1, 1]} : vector<2x128xf32> to vector<2x32xf32>
    %169 = math.tanh %168 : vector<2x32xf32>
    %170 = arith.mulf %166, %152 : vector<2x32xf32>
    %171 = arith.mulf %165, %169 : vector<2x32xf32>
    %172 = arith.addf %170, %171 : vector<2x32xf32>
    %173 = math.tanh %172 : vector<2x32xf32>
    %174 = arith.mulf %167, %173 : vector<2x32xf32>
    %c0_23 = arith.constant 0 : index
    %c0_24 = arith.constant 0 : index
    %175 = vector.load %arg4[%c0_23, %c0_24] : memref<32x8xf32, #tpu.memory_space<vmem>>, vector<32x8xf32>
    %cst_25 = arith.constant dense<0.000000e+00> : vector<2x8xf32>
    %176 = tpu.matmul %174, %175, %cst_25 {dimension_numbers = #tpu.dot_dimension_numbers<[1], [0], [0], [1], [0, 0, 1, 1], [], []>} : vector<2x32xf32>, vector<32x8xf32>, vector<2x8xf32> -> vector<2x8xf32>
    %c0_26 = arith.constant 0 : index
    %c0_27 = arith.constant 0 : index
    %177 = vector.load %arg5[%c0_26, %c0_27] : memref<32x8xf32, #tpu.memory_space<vmem>>, vector<32x8xf32>
    %cst_28 = arith.constant dense<0.000000e+00> : vector<2x8xf32>
    %178 = tpu.matmul %19, %177, %cst_28 {dimension_numbers = #tpu.dot_dimension_numbers<[1], [0], [0], [1], [0, 0, 1, 1], [], []>} : vector<2x32xf32>, vector<32x8xf32>, vector<2x8xf32> -> vector<2x8xf32>
    %179 = arith.addf %176, %178 : vector<2x8xf32>
    %c0_29 = arith.constant 0 : index
    %c0_30 = arith.constant 0 : index
    %180 = vector.load %arg6[%c0_29, %c0_30] : memref<1x8xf32, #tpu.memory_space<vmem>>, vector<1x8xf32>
    %181 = vector.broadcast %180 : vector<1x8xf32> to vector<2x8xf32>
    %182 = arith.addf %179, %181 : vector<2x8xf32>
    %c0_31 = arith.constant 0 : index
    %c0_32 = arith.constant 0 : index
    %183 = vector.load %arg7[%c0_31, %c0_32] : memref<2x8xf32, #tpu.memory_space<vmem>>, vector<2x8xf32>
    tpu.vector_store %arg7[%c0_31, %c0_32], %182 {strides = array<i32>} : memref<2x8xf32, #tpu.memory_space<vmem>>, vector<2x8xf32>,
    return
  }
}

</mosaic_0001>

<bundles_post_ra>
// kernel: _bilstm_forward.1
= control target key start
LH: loop header
LB: loop body
LE: loop exit
PB: predicated region body
PF: predicated region fallthrough
CT: control target
= control target key end

     0   :  { %v1132_v2 = vmov 0   ;;  %vm59_vm0 = vcmask 130048   ;;  %s1356_s0 = inlined_call_operand.vmem [shape: bf16[16,16], index: 0, kind: input, shape index: {}]   ;;  %s1357_s1 = inlined_call_operand.vmem [shape: bf16[16,256], index: 1, kind: input, shape index: {}]   ;;  %s1358_s2 = inlined_call_operand.vmem [shape: f32[1,256], index: 2, kind: input, shape index: {}]   ;;  %s1359_s3 = inlined_call_operand.vmem [shape: bf16[32,128], index: 3, kind: input, shape index: {}]   ;;  %s1360_s4 = inlined_call_operand.vmem [shape: f32[32,8], index: 4, kind: input, shape index: {}]   ;;  %s1361_s5 = inlined_call_operand.vmem [shape: f32[32,8], index: 5, kind: input, shape index: {}]   ;;  %s1362_s6 = inlined_call_operand.vmem [shape: f32[1,8], index: 6, kind: input, shape index: {}]   ;;  %s1363_s7 = inlined_call_operand.hbm [shape: f32[2,8], index: 7, kind: output, shape index: {}]  }
   0x1   :  { %v1032_v0 = vld [vmem:[%s1357_s1 + $0x4] ss:$8 sps:$4 sm:$0xff]   ;;  %v1034_v1 = vld [vmem:[%s1357_s1] ss:$8 sps:$4 sm:$0xff]   ;;  %95 = vmatprep.mubr.bf16.mxu0 %v1132_v2 }
   0x2   :  { %77 = vmatprep.subr.bf16.mxu0 %v1032_v0  ;;  %v1035_v3 = vld [vmem:[%s1356_s0] sm:$0xff]  }
   0x3   :  { %78 = vmatpush1.bf16.msra.mxu0 %v1034_v1 }
   0x4   :  { %12 = vsyncpa [#allocation3], 0  ;;  %v34_v4 = vlaneseq  ;;  %v1193_v7 = vld [vmem:[%s1358_s2] sm:$0x3]  ;;  %s1133_s0 = smov 32   ;;  %v1206_v21 = vld [vmem:[%s1359_s3 + $0x8] sm:$0xff]  }
   0x5   :  { %v1134_v22 = vmov 0.0   ;;  %vm1135_vm1 = vmmov 0   ;;  %v1215_v23 = vld [vmem:[%s1359_s3] sm:$0xff]   ;;  %s1136_s3 = smov 64   ;;  %vm161_vm2 = vcmask 261120   ;;  %vm876_vm3 = vcmask 58368  }
   0x6   :  { %895 = vmatmul.mubr.msk.bf16.vlgmr.msra.gmra.mxu0 %vm59_vm0, %v1035_v3  ;;  %v1187_v5 = vshrl.u32 %v34_v4, 7  ;;  %948 = vmatprep.subr.bf16.mxu1 %v1134_v22 }
   0x7   :  { %952 = vmatprep.mubr.msk.bf16.mxu1 %vm1135_vm1, %v1134_v22  ;;  %949 = vmatpush3.bf16.msra.mxu1 %v1206_v21 }
   0x8   :  { %v36_v6 = vsub.s32 0, %v1187_v5  ;;  %956 = vmatprep.subr.bf16.mxu0 %v1134_v22  ;;  %950 = vmatprep.subr.bf16.mxu1 %v1134_v22 }
   0x9   :  { %957 = vmatpush3.bf16.msra.mxu0 %v1206_v21  ;;  %960 = vmatprep.mubr.msk.bf16.mxu0 %vm1135_vm1, %v1134_v22 }
   0xa   :  { %v37_v8 = vrot.slane %v1193_v7, %v36_v6  ;;  %958 = vmatprep.subr.bf16.mxu0 %v1134_v22 }
   0xb   :  { %951 = vmatpush3.bf16.msra.mxu1 %v1215_v23 }
   0xc   :  { %964 = vmatprep.subr.bf16.mxu1 %v1134_v22 }
   0xd   :  { %959 = vmatpush3.bf16.msra.mxu0 %v1215_v23 }
   0xe   :  { %972 = vmatprep.subr.bf16.mxu0 %v1134_v22 }
  0xc6   :  { %v97_v9 = vpop.f32.mrf.mxu0 }
  0xc7   :  { %v1196_v10 = vadd.f32 %v97_v9, %v37_v8 }
  0xc8   :  { %v99_v11 = vpop.f32.mrf.mxu0 }
  0xc9   :  { %1038 = vtanh.f32 %v1196_v10  ;;  %v897_v15 = vmul.f32 -1.442695, %v1196_v10 }
  0xca   :  { %v100_v12 = vpop.f32.mrf.mxu0 }
  0xcb   :  { %v1199_v13 = vadd.f32 %v100_v12, %v37_v8  ;;  %1040 = vpow2.f32 %v897_v15 }
  0xcc   :  { %v1249_v53 = vpop.f32.mrf.mxu0 }
  0xd6   :  { %v1039_v14 = vpop.eup %1038 }
  0xd7   :  { %135 = vrot.lane.b32.xlu0 %v1039_v14, %s1133_s0 }
  0xd8   :  { %v1041_v16 = vpop.eup %1040 }
  0xd9   :  { %v130_v17 = vadd.f32 1.0, %v1041_v16 }
  0xdb   :  { %1042 = vrcp.f32 %v130_v17 }
  0xe8   :  { %v1043_v18 = vpop.eup %1042 }
 0x149   :  { %v136_v19 = vpop.permute.xlu0 %135 }
 0x14a   :  { %v138_v20 = vmul.f32 %v1043_v18, %v136_v19 }
 0x14c   :  { %1044 = vtanh.f32 %v138_v20  ;;  %v217_v25 = vrot.slane %v138_v20, 6 }
 0x159   :  { %v1045_v24 = vpop.eup %1044 }
 0x15a   :  { %141 = vrot.lane.b32.xlu0 %v1045_v24, %s1136_s3 }
 0x15e   :  { %218 = vrot.lane.b32.xlu0 %v217_v25, %s1133_s0 }
 0x1cc   :  { %v142_v26 = vpop.permute.xlu0 %141 }
 0x1cd   :  { %v144_v27 = vmul.f32 %v1043_v18, %v142_v26 }
 0x1cf   :  { %v145_v28 = vpack.c.bf16 %v144_v27, %v144_v27 }
 0x1d0   :  { %v219_v43 = vpop.permute.xlu0 %218 }
 0x1d1   :  { %147 = vrot.lane.b32.xlu1 %v145_v28, %s1136_s3 }
 0x243   :  { %v148_v29 = vpop.permute.xlu1 %147 }
 0x244   :  { %953 = vmatmul.mubr.msk.bf16.vlgmr.msra.gmra.mxu1 %vm161_vm2, %v148_v29 }
 0x245   :  { %965 = vmatpush3.bf16.msra.mxu1 %v1206_v21  ;;  %968 = vmatprep.mubr.msk.bf16.mxu1 %vm1135_vm1, %v1134_v22 }
 0x246   :  { %966 = vmatprep.subr.bf16.mxu1 %v1134_v22 }
 0x249   :  { %967 = vmatpush3.bf16.msra.mxu1 %v1215_v23 }
 0x24a   :  { %980 = vmatprep.subr.bf16.mxu1 %v1134_v22 }
 0x304   :  { %v199_v30 = vpop.f32.mrf.mxu1 }
 0x305   :  { %v206_v31 = vrot.slane %v199_v30, 6 }
 0x306   :  { %v954_v32 = vpop.f32.mrf.mxu1 }
 0x307   :  { %v208_v33 = vadd.f32 %v206_v31, %v1196_v10 }
 0x308   :  { %v202_v34 = vpop.f32.mrf.mxu1 }
 0x309   :  { %1046 = vtanh.f32 %v208_v33  ;;  %v901_v37 = vmul.f32 -1.442695, %v208_v33 }
 0x30a   :  { %v955_v35 = vpop.f32.mrf.mxu1 }
 0x30b   :  { %1048 = vpow2.f32 %v901_v37 }
 0x316   :  { %v1047_v36 = vpop.eup %1046 }
 0x317   :  { %223 = vrot.lane.b32.xlu1 %v1047_v36, %s1133_s0 }
 0x318   :  { %v1049_v38 = vpop.eup %1048 }
 0x319   :  { %v212_v39 = vadd.f32 1.0, %v1049_v38 }
 0x31b   :  { %1050 = vrcp.f32 %v212_v39 }
 0x328   :  { %v1051_v40 = vpop.eup %1050 }
 0x329   :  { %v221_v44 = vmul.f32 %v1051_v40, %v219_v43 }
 0x389   :  { %v224_v41 = vpop.permute.xlu1 %223 }
 0x38a   :  { %v226_v42 = vmul.f32 %v1051_v40, %v224_v41 }
 0x38c   :  { %228 = vrot.lane.b32.xlu1 %v226_v42, %s1133_s0 }
 0x3fe   :  { %v229_v45 = vpop.permute.xlu1 %228 }
 0x3ff   :  { %v231_v46 = vadd.f32 %v229_v45, %v221_v44 }
 0x401   :  { %1052 = vtanh.f32 %v231_v46  ;;  %v298_v3 = vrot.slane %v231_v46, 6 }
 0x40e   :  { %v1053_v47 = vpop.eup %1052 }
 0x40f   :  { %234 = vrot.lane.b32.xlu0 %v1053_v47, %s1133_s0 }
 0x481   :  { %v235_v48 = vpop.permute.xlu0 %234 }
 0x482   :  { %v237_v49 = vmul.f32 %v1051_v40, %v235_v48 }
 0x484   :  { %v238_v50 = vpack.c.bf16 %v237_v49, %v237_v49 }
 0x486   :  { %v240_v51 = vrot.slane %v238_v50, 1 }
 0x488   :  { %241 = vrot.lane.b32.xlu1 %v240_v51, %s1136_s3 }
 0x4fa   :  { %v242_v52 = vpop.permute.xlu1 %241 }
 0x4fb   :  { %961 = vmatmul.mubr.msk.bf16.vlgmr.msra.gmra.mxu0 %vm161_vm2, %v242_v52 }
 0x4fc   :  { %973 = vmatpush3.bf16.msra.mxu0 %v1206_v21  ;;  %976 = vmatprep.mubr.msk.bf16.mxu0 %vm1135_vm1, %v1134_v22 }
 0x4fd   :  { %974 = vmatprep.subr.bf16.mxu0 %v1134_v22 }
 0x500   :  { %975 = vmatpush3.bf16.msra.mxu0 %v1215_v23 }
 0x501   :  { %988 = vmatprep.subr.bf16.mxu0 %v1134_v22 }
 0x5bb   :  { %v280_v54 = vpop.f32.mrf.mxu0 }
 0x5bc   :  { %v287_v55 = vrot.slane %v280_v54, 4 }
 0x5bd   :  { %v962_v56 = vpop.f32.mrf.mxu0 }
 0x5be   :  { %v289_v57 = vadd.f32 %v287_v55, %v1196_v10 }
 0x5bf   :  { %v283_v58 = vpop.f32.mrf.mxu0 }
 0x5c0   :  { %1054 = vtanh.f32 %v289_v57  ;;  %v903_v61 = vmul.f32 -1.442695, %v289_v57 }
 0x5c1   :  { %v963_v59 = vpop.f32.mrf.mxu0 }
 0x5c2   :  { %1056 = vpow2.f32 %v903_v61 }
 0x5cd   :  { %v1055_v60 = vpop.eup %1054 }
 0x5ce   :  { %302 = vrot.lane.b32.xlu0 %v1055_v60, %s1133_s0 }
 0x5cf   :  { %v1057_v62 = vpop.eup %1056 }
 0x5d0   :  { %v293_v63 = vadd.f32 1.0, %v1057_v62 }
 0x5d2   :  { %1058 = vrcp.f32 %v293_v63 }
 0x5df   :  { %v1059_v0 = vpop.eup %1058 }
 0x5e0   :  { %v300_v4 = vmul.f32 %v1059_v0, %v298_v3 }
 0x640   :  { %v303_v1 = vpop.permute.xlu0 %302 }
 0x641   :  { %v305_v2 = vmul.f32 %v1059_v0, %v303_v1 }
 0x643   :  { %307 = vrot.lane.b32.xlu1 %v305_v2, %s1133_s0 }
 0x6b5   :  { %v308_v6 = vpop.permute.xlu1 %307 }
 0x6b6   :  { %v310_v8 = vadd.f32 %v308_v6, %v300_v4 }
 0x6b8   :  { %1060 = vtanh.f32 %v310_v8  ;;  %v377_v33 = vrot.slane %v310_v8, 6 }
 0x6c5   :  { %v1061_v9 = vpop.eup %1060 }
 0x6c6   :  { %313 = vrot.lane.b32.xlu0 %v1061_v9, %s1133_s0 }
 0x738   :  { %v314_v11 = vpop.permute.xlu0 %313 }
 0x739   :  { %v316_v12 = vmul.f32 %v1059_v0, %v314_v11 }
 0x73b   :  { %v317_v14 = vpack.c.bf16 %v316_v12, %v316_v12 }
 0x73d   :  { %v319_v15 = vrot.slane %v317_v14, 2 }
 0x73f   :  { %320 = vrot.lane.b32.xlu1 %v319_v15, %s1136_s3 }
 0x7b1   :  { %v321_v16 = vpop.permute.xlu1 %320 }
 0x7b2   :  { %969 = vmatmul.mubr.msk.bf16.vlgmr.msra.gmra.mxu1 %vm161_vm2, %v321_v16 }
 0x7b3   :  { %981 = vmatpush3.bf16.msra.mxu1 %v1206_v21  ;;  %984 = vmatprep.mubr.msk.bf16.mxu1 %vm1135_vm1, %v1134_v22 }
 0x7b4   :  { %982 = vmatprep.subr.bf16.mxu1 %v1134_v22 }
 0x7b7   :  { %983 = vmatpush3.bf16.msra.mxu1 %v1215_v23 }
 0x7b8   :  { %996 = vmatprep.subr.bf16.mxu1 %v1134_v22 }
 0x872   :  { %v359_v17 = vpop.f32.mrf.mxu1 }
 0x873   :  { %v366_v18 = vrot.slane %v359_v17, 2 }
 0x874   :  { %v970_v19 = vpop.f32.mrf.mxu1 }
 0x875   :  { %v368_v20 = vadd.f32 %v366_v18, %v1196_v10 }
 0x876   :  { %v362_v24 = vpop.f32.mrf.mxu1 }
 0x877   :  { %1062 = vtanh.f32 %v368_v20  ;;  %v905_v27 = vmul.f32 -1.442695, %v368_v20 }
 0x878   :  { %v971_v25 = vpop.f32.mrf.mxu1 }
 0x879   :  { %1064 = vpow2.f32 %v905_v27 }
 0x884   :  { %v1063_v26 = vpop.eup %1062 }
 0x885   :  { %381 = vrot.lane.b32.xlu0 %v1063_v26, %s1133_s0 }
 0x886   :  { %v1065_v28 = vpop.eup %1064 }
 0x887   :  { %v372_v29 = vadd.f32 1.0, %v1065_v28 }
 0x889   :  { %1066 = vrcp.f32 %v372_v29 }
 0x896   :  { %v1067_v30 = vpop.eup %1066 }
 0x897   :  { %v379_v34 = vmul.f32 %v1067_v30, %v377_v33 }
 0x8f7   :  { %v382_v31 = vpop.permute.xlu0 %381 }
 0x8f8   :  { %v384_v32 = vmul.f32 %v1067_v30, %v382_v31 }
 0x8fa   :  { %386 = vrot.lane.b32.xlu1 %v384_v32, %s1133_s0 }
 0x96c   :  { %v387_v35 = vpop.permute.xlu1 %386 }
 0x96d   :  { %v389_v10 = vadd.f32 %v387_v35, %v379_v34 }
 0x96f   :  { %1068 = vtanh.f32 %v389_v10  ;;  %v453_v55 = vrot.slane %v389_v10, 6 }
 0x97c   :  { %v1069_v36 = vpop.eup %1068 }
 0x97d   :  { %392 = vrot.lane.b32.xlu0 %v1069_v36, %s1133_s0 }
 0x9ef   :  { %v393_v37 = vpop.permute.xlu0 %392 }
 0x9f0   :  { %v395_v38 = vmul.f32 %v1067_v30, %v393_v37 }
 0x9f2   :  { %v396_v39 = vpack.c.bf16 %v395_v38, %v395_v38 }
 0x9f4   :  { %v398_v40 = vrot.slane %v396_v39, 3 }
 0x9f6   :  { %399 = vrot.lane.b32.xlu1 %v398_v40, %s1136_s3 }
 0xa68   :  { %v400_v41 = vpop.permute.xlu1 %399 }
 0xa69   :  { %977 = vmatmul.mubr.msk.bf16.vlgmr.msra.gmra.mxu0 %vm161_vm2, %v400_v41 }
 0xa6a   :  { %989 = vmatpush3.bf16.msra.mxu0 %v1206_v21  ;;  %992 = vmatprep.mubr.msk.bf16.mxu0 %vm1135_vm1, %v1134_v22 }
 0xa6b   :  { %990 = vmatprep.subr.bf16.mxu0 %v1134_v22 }
 0xa6e   :  { %991 = vmatpush3.bf16.msra.mxu0 %v1215_v23 }
 0xa6f   :  { %1004 = vmatprep.subr.mxu0 %v1134_v22 }
 0xb29   :  { %v438_v42 = vpop.f32.mrf.mxu0 }
 0xb2a   :  { %v444_v43 = vadd.f32 %v438_v42, %v1199_v13 }
 0xb2b   :  { %v978_v44 = vpop.f32.mrf.mxu0 }
 0xb2c   :  { %1070 = vtanh.f32 %v444_v43  ;;  %v907_v48 = vmul.f32 -1.442695, %v444_v43 }
 0xb2d   :  { %v441_v45 = vpop.f32.mrf.mxu0 }
 0xb2e   :  { %1072 = vpow2.f32 %v907_v48  ;;  %v40_v45 = vsub.s32 1, %v1187_v5 }
 0xb2f   :  { %v979_v46 = vpop.f32.mrf.mxu0 }
 0xb30   :  { %v41_v46 = vrot.slane %v1193_v7, %v40_v45 }
 0xb39   :  { %v1071_v47 = vpop.eup %1070 }
 0xb3a   :  { %457 = vrot.lane.b32.xlu0 %v1071_v47, %s1133_s0  ;;  %v103_v47 = vadd.f32 %v1249_v53, %v41_v46 }
 0xb3b   :  { %v1073_v49 = vpop.eup %1072 }
 0xb3c   :  { %v448_v50 = vadd.f32 1.0, %v1073_v49 }
 0xb3e   :  { %1074 = vrcp.f32 %v448_v50 }
 0xb4b   :  { %v1075_v51 = vpop.eup %1074 }
 0xb4c   :  { %v455_v56 = vmul.f32 %v1075_v51, %v453_v55 }
 0xbac   :  { %v458_v52 = vpop.permute.xlu0 %457 }
 0xbad   :  { %v460_v54 = vmul.f32 %v1075_v51, %v458_v52 }
 0xbaf   :  { %462 = vrot.lane.b32.xlu1 %v460_v54, %s1133_s0  ;;  %v896_v54 = vmul.f32 -1.442695, %v103_v47 }
 0xc21   :  { %v463_v57 = vpop.permute.xlu1 %462 }
 0xc22   :  { %v465_v58 = vadd.f32 %v463_v57, %v455_v56 }
 0xc24   :  { %1076 = vtanh.f32 %v465_v58  ;;  %v531_v15 = vrot.slane %v465_v58, 6 }
 0xc31   :  { %v1077_v59 = vpop.eup %1076 }
 0xc32   :  { %468 = vrot.lane.b32.xlu0 %v1077_v59, %s1133_s0  ;;  %v715_v59 = vld [vmem:[%s1361_s5 + $0x18] sm:$0xff] }
 0xca4   :  { %v469_v60 = vpop.permute.xlu0 %468 }
 0xca5   :  { %v471_v61 = vmul.f32 %v1075_v51, %v469_v60  ;;  %v714_v60 = vld [vmem:[%s1361_s5 + $0x10] sm:$0xff] }
 0xca7   :  { %v472_v62 = vpack.c.bf16 %v471_v61, %v471_v61  ;;  %v713_v61 = vld [vmem:[%s1361_s5 + $0x8] sm:$0xff] }
 0xca9   :  { %474 = vrot.lane.b32.xlu1 %v472_v62, %s1136_s3  ;;  %v712_v62 = vld [vmem:[%s1361_s5] sm:$0xff] }
 0xd1b   :  { %v475_v63 = vpop.permute.xlu1 %474 }
 0xd1c   :  { %985 = vmatmul.mubr.msk.bf16.vlgmr.msra.gmra.mxu1 %vm161_vm2, %v475_v63 }
 0xd1d   :  { %997 = vmatpush3.bf16.msra.mxu1 %v1206_v21  ;;  %1000 = vmatprep.mubr.msk.bf16.mxu1 %vm1135_vm1, %v1134_v22 }
 0xd1e   :  { %998 = vmatprep.subr.bf16.mxu1 %v1134_v22 }
 0xd21   :  { %999 = vmatpush3.bf16.msra.mxu1 %v1215_v23 }
 0xd22   :  { %1015 = vmatprep.subr.mxu1 %v1134_v22 }
 0xddc   :  { %v513_v0 = vpop.f32.mrf.mxu1 }
 0xddd   :  { %v520_v1 = vrot.slane %v513_v0, 6 }
 0xdde   :  { %v986_v2 = vpop.f32.mrf.mxu1 }
 0xddf   :  { %v522_v3 = vadd.f32 %v520_v1, %v1199_v13 }
 0xde0   :  { %v516_v4 = vpop.f32.mrf.mxu1 }
 0xde1   :  { %1078 = vtanh.f32 %v522_v3  ;;  %v909_v21 = vmul.f32 -1.442695, %v522_v3 }
 0xde2   :  { %v987_v6 = vpop.f32.mrf.mxu1 }
 0xde3   :  { %1080 = vpow2.f32 %v909_v21 }
 0xdee   :  { %v1079_v8 = vpop.eup %1078 }
 0xdef   :  { %535 = vrot.lane.b32.xlu0 %v1079_v8, %s1133_s0 }
 0xdf0   :  { %v1081_v9 = vpop.eup %1080 }
 0xdf1   :  { %v526_v11 = vadd.f32 1.0, %v1081_v9 }
 0xdf3   :  { %1082 = vrcp.f32 %v526_v11 }
 0xe00   :  { %v1083_v12 = vpop.eup %1082 }
 0xe01   :  { %v533_v16 = vmul.f32 %v1083_v12, %v531_v15 }
 0xe61   :  { %v536_v23 = vpop.permute.xlu0 %535 }
 0xe62   :  { %v538_v14 = vmul.f32 %v1083_v12, %v536_v23 }
 0xe64   :  { %540 = vrot.lane.b32.xlu1 %v538_v14, %s1133_s0 }
 0xed6   :  { %v541_v17 = vpop.permute.xlu1 %540 }
 0xed7   :  { %v543_v18 = vadd.f32 %v541_v17, %v533_v16 }
 0xed9   :  { %1084 = vtanh.f32 %v543_v18  ;;  %v610_v40 = vrot.slane %v543_v18, 6 }
 0xee6   :  { %v1085_v19 = vpop.eup %1084 }
 0xee7   :  { %546 = vrot.lane.b32.xlu0 %v1085_v19, %s1133_s0 }
 0xf59   :  { %v547_v20 = vpop.permute.xlu0 %546 }
 0xf5a   :  { %v549_v24 = vmul.f32 %v1083_v12, %v547_v20 }
 0xf5c   :  { %v550_v25 = vpack.c.bf16 %v549_v24, %v549_v24 }
 0xf5e   :  { %v552_v26 = vrot.slane %v550_v25, 1 }
 0xf60   :  { %553 = vrot.lane.b32.xlu1 %v552_v26, %s1136_s3  ;;  %v711_v26 = vld [vmem:[%s1360_s4 + $0x18] sm:$0xff] }
 0xfd2   :  { %v554_v27 = vpop.permute.xlu1 %553 }
 0xfd3   :  { %993 = vmatmul.mubr.msk.bf16.vlgmr.msra.gmra.mxu0 %vm161_vm2, %v554_v27  ;;  %v710_v27 = vld [vmem:[%s1360_s4 + $0x10] sm:$0xff] }
 0xfd4   :  { %1012 = vmatprep.mubr.msk.f32.mxu0 %vm1135_vm1, %v1134_v22  ;;  %1005 = vmatpush3.msra.mxu0 %v715_v59 }
 0xfd5   :  { %1006 = vmatprep.subr.mxu0 %v1134_v22 }
 0xfd6   :  { %1007 = vmatpush3.msra.mxu0 %v714_v60 }
 0xfd7   :  { %1008 = vmatprep.subr.mxu0 %v1134_v22 }
 0xfd8   :  { %1009 = vmatpush3.msra.mxu0 %v713_v61 }
 0xfd9   :  { %1010 = vmatprep.subr.mxu0 %v1134_v22 }
 0xfda   :  { %1011 = vmatpush3.msra.mxu0 %v712_v62 }
0x1093   :  { %v592_v28 = vpop.f32.mrf.mxu0 }
0x1094   :  { %v599_v29 = vrot.slane %v592_v28, 4  ;;  %v709_v28 = vld [vmem:[%s1360_s4 + $0x8] sm:$0xff] }
0x1095   :  { %v994_v30 = vpop.f32.mrf.mxu0 }
0x1096   :  { %v601_v31 = vadd.f32 %v599_v29, %v1199_v13  ;;  %v708_v29 = vld [vmem:[%s1360_s4] sm:$0xff]  ;;  %s1137_s4 = smov [#allocation2]  }
0x1097   :  { %v595_v32 = vpop.f32.mrf.mxu0  ;;  %s884_s28 = sshll.u32 %s1137_s4, 4  ;;  %s885_s28 = int_to_ptr.vmem [resolvable:$true] %s884_s28 }
0x1098   :  { %1086 = vtanh.f32 %v601_v31  ;;  %v911_v35 = vmul.f32 -1.442695, %v601_v31  ;;  %s1110_s29 = scalar_lea.vmem %s885_s28, 32  ;;  %p1115_p1 = scmp.lt.s32.totalorder %s885_s28, %s885_s28 }
0x1099   :  { %v995_v33 = vpop.f32.mrf.mxu0  ;;  %p1111_p0 = scmp.ne.s32.totalorder %s885_s28, %s1110_s29  ;;  %p1116_p2 = scmp.lt.s32.totalorder %s1110_s29, %s1110_s29 }
0x109a   :  { %1088 = vpow2.f32 %v911_v35 }
0x109b   :  { %p1117_p3 = por %p1116_p2, %p1115_p1 }
0x109d   :  { %p1118_p4 = pnand %p1117_p3, %p1111_p0 }
0x10a5   :  { %v1087_v34 = vpop.eup %1086 }
0x10a6   :  { %614 = vrot.lane.b32.xlu0 %v1087_v34, %s1133_s0 }
0x10a7   :  { %v1089_v10 = vpop.eup %1088 }
0x10a8   :  { %v605_v36 = vadd.f32 1.0, %v1089_v10  ;;  %v916_v10 = vld [vmem:[%s1362_s6] ss:$0 sm:$0xff] }
0x10aa   :  { %1090 = vrcp.f32 %v605_v36 }
0x10b7   :  { %v1091_v37 = vpop.eup %1090 }
0x10b8   :  { %v612_v41 = vmul.f32 %v1091_v37, %v610_v40 }
0x1118   :  { %v615_v38 = vpop.permute.xlu0 %614 }
0x1119   :  { %v617_v39 = vmul.f32 %v1091_v37, %v615_v38 }
0x111b   :  { %619 = vrot.lane.b32.xlu1 %v617_v39, %s1133_s0 }
0x118d   :  { %v620_v42 = vpop.permute.xlu1 %619 }
0x118e   :  { %v1298_v43 = vadd.f32 %v620_v42, %v612_v41 }
0x1190   :  { %1092 = vtanh.f32 %v1298_v43 }
0x1191   :  { %1094 = vtanh.f32 %v103_v47 }
0x1192   :  { %1096 = vpow2.f32 %v896_v54 }
0x119d   :  { %v1093_v44 = vpop.eup %1092 }
0x119e   :  { %625 = vrot.lane.b32.xlu0 %v1093_v44, %s1133_s0  ;;  %v1095_v52 = vpop.eup %1094 }
0x119f   :  { %v1097_v55 = vpop.eup %1096 }
0x11a0   :  { %v108_v56 = vadd.f32 1.0, %v1097_v55 }
0x11a2   :  { %1098 = vrcp.f32 %v108_v56 }
0x11af   :  { %v1099_v7 = vpop.eup %1098 }
0x1210   :  { %v626_v48 = vpop.permute.xlu0 %625 }
0x1211   :  { %v628_v49 = vmul.f32 %v1091_v37, %v626_v48 }
0x1213   :  { %v629_v50 = vpack.c.bf16 %v628_v49, %v628_v49 }
0x1215   :  { %v631_v51 = vrot.slane %v629_v50, 2 }
0x1217   :  { %632 = vrot.lane.b32.xlu1 %v631_v51, %s1136_s3 }
0x121b   :  { %113 = vrot.lane.b32.xlu1 %v1095_v52, %s1133_s0 }
0x1289   :  { %v633_v5 = vpop.permute.xlu1 %632 }
0x128a   :  { %1001 = vmatmul.mubr.msk.bf16.vlgmr.msra.gmra.mxu1 %vm161_vm2, %v633_v5 }
0x128b   :  { %1023 = vmatprep.mubr.msk.f32.mxu1 %vm1135_vm1, %v1134_v22  ;;  %1016 = vmatpush3.msra.mxu1 %v711_v26 }
0x128c   :  { %1017 = vmatprep.subr.mxu1 %v1134_v22 }
0x128d   :  { %v114_v53 = vpop.permute.xlu1 %113  ;;  %1018 = vmatpush3.msra.mxu1 %v710_v27 }
0x128e   :  { %v116_v57 = vmul.f32 %v1099_v7, %v114_v53  ;;  %1019 = vmatprep.subr.mxu1 %v1134_v22 }
0x128f   :  { %1020 = vmatpush3.msra.mxu1 %v709_v28 }
0x1290   :  { %1100 = vtanh.f32 %v116_v57  ;;  %1021 = vmatprep.subr.mxu1 %v1134_v22 }
0x1291   :  { %1022 = vmatpush3.msra.mxu1 %v708_v29 }
0x129d   :  { %v1101_v58 = vpop.eup %1100 }
0x129e   :  { %119 = vrot.lane.b32.xlu1 %v1101_v58, %s1136_s3 }
0x1310   :  { %v120_v63 = vpop.permute.xlu1 %119 }
0x1311   :  { %v122_v0 = vmul.f32 %v1099_v7, %v120_v63 }
0x1313   :  { %v717_v1 = vrot.slane %v122_v0, 6 }
0x1315   :  { %718 = vrot.lane.b32.xlu1 %v717_v1, %s1136_s3 }
0x134a   :  { %v671_v2 = vpop.f32.mrf.mxu1 }
0x134b   :  { %v678_v3 = vrot.slane %v671_v2, 2 }
0x134c   :  { %v1002_v4 = vpop.f32.mrf.mxu1 }
0x134d   :  { %v680_v6 = vadd.f32 %v678_v3, %v1199_v13  ;;  %v689_v13 = vrot.slane %v1298_v43, 6 }
0x134e   :  { %v674_v8 = vpop.f32.mrf.mxu1 }
0x134f   :  { %1102 = vtanh.f32 %v680_v6  ;;  %v913_v12 = vmul.f32 -1.442695, %v680_v6 }
0x1350   :  { %v1003_v21 = vpop.f32.mrf.mxu1 }
0x1351   :  { %1104 = vpow2.f32 %v913_v12 }
0x135c   :  { %v1103_v9 = vpop.eup %1102 }
0x135d   :  { %693 = vrot.lane.b32.xlu0 %v1103_v9, %s1133_s0 }
0x135e   :  { %v1105_v23 = vpop.eup %1104 }
0x135f   :  { %v684_v14 = vadd.f32 1.0, %v1105_v23 }
0x1361   :  { %1106 = vrcp.f32 %v684_v14 }
0x136e   :  { %v1107_v15 = vpop.eup %1106 }
0x136f   :  { %v691_v18 = vmul.f32 %v1107_v15, %v689_v13 }
0x1387   :  { %v719_v11 = vpop.permute.xlu1 %718 }
0x1388   :  { %1013 = vmatmul.mubr.msk.f32.vlgmr.msra.gmra.mxu0 %vm161_vm2, %v719_v11 }
0x13cf   :  { %v694_v16 = vpop.permute.xlu0 %693 }
0x13d0   :  { %v696_v17 = vmul.f32 %v1107_v15, %v694_v16 }
0x13d2   :  { %698 = vrot.lane.b32.xlu0 %v696_v17, %s1133_s0 }
0x1444   :  { %v699_v19 = vpop.permute.xlu0 %698 }
0x1445   :  { %v701_v20 = vadd.f32 %v699_v19, %v691_v18 }
0x1447   :  { %1108 = vtanh.f32 %v701_v20 }
0x1448   :  { %v788_v24 = vpop.f32.mrf.mxu0 }
0x144a   :  { %v1014_v25 = vpop.f32.mrf.mxu0 }
0x1454   :  { %v1109_v30 = vpop.eup %1108 }
0x1455   :  { %704 = vrot.lane.b32.xlu0 %v1109_v30, %s1133_s0 }
0x14c7   :  { %v705_v31 = vpop.permute.xlu0 %704 }
0x14c8   :  { %v707_v32 = vmul.f32 %v1107_v15, %v705_v31 }
0x14ca   :  { %v793_v33 = vrot.slane %v707_v32, 6 }
0x14cc   :  { %794 = vrot.lane.b32.xlu0 %v793_v33, %s1136_s3 }
0x153e   :  { %v795_v34 = vpop.permute.xlu0 %794 }
0x153f   :  { %1024 = vmatmul.mubr.msk.f32.vlgmr.msra.gmra.mxu1 %vm161_vm2, %v795_v34 }
0x15ff   :  { %v864_v35 = vpop.f32.mrf.mxu1 }
0x1600   :  { %v865_v22 = vadd.f32 %v864_v35, %v788_v24 }
0x1601   :  { %v1025_v36 = vpop.f32.mrf.mxu1 }
0x1602   :  { %v875_v37 = vadd.f32 %v916_v10, %v865_v22 }
0x1604   :  { %877 = vst.msk [vmem:[#allocation2] sm:$0x3] %vm876_vm3, %v875_v37 }
0x1605   :  { %1121 = shalt.err (!%p1118_p4)
}
0x1606   :  { %887 = dma.vmem_to_hbm [thread:$0]  %s885_s28, 32, %s1363_s7, [#allocation3]  }
0x1607   :  { %1130 = dma.done.wait [#allocation3], 32  }
0x1608   :  { %1131 = vsyncadd [#allocation3], 4294967264 }
0x1609   :  { %891 = vsyncpa [#allocation3], 1 }

</bundles_post_ra>
